<compile_context>
chip_gen: v6e
topology: v6e:2x2x1
jax: 0.10.0
libtpu: 0.0.40
codegen_flags: <defaults>
</compile_context>

<pallas_src>
import functools

import jax
import jax.numpy as jnp
from jax.experimental import pallas as pl
from jax.experimental.pallas import tpu as pltpu


def _round_up(x, m):
    return (x + m - 1) // m * m


# ---------------------------------------------------------------------------
# Kernel 1: projection for ALL heads at once.
#   h      = X @ W_all              (TM, Cp)   head-packed features, f32 acc
#   logits = h @ ATT                (TM, 128)  col l = a_src head l,
#                                              col heads+l = a_dst head l
# h is written back in bf16 (feeds the bf16 aggregation matmul); logits stay
# f32 (exp is sensitive to logit precision).  Both outputs are lane dense.
# ---------------------------------------------------------------------------
def _proj_kernel(x_ref, w_ref, att_ref, h_ref, lg_ref):
    h = jnp.dot(x_ref[...], w_ref[...], preferred_element_type=jnp.float32)
    lg_ref[...] = jnp.dot(h, att_ref[...], preferred_element_type=jnp.float32)
    h_ref[...] = h.astype(h_ref.dtype)


# ---------------------------------------------------------------------------
# Kernel 2: fused multi-head attention aggregation.
#   grid = (row tiles [parallel], neighbor tiles [arbitrary / reduction])
#   The A tile is loaded once per grid step and reused for every head.
#   Per head: scores in f32, bf16 cast only for the s @ H MXU matmul.
#   Numerator + denominator accumulated online in f32 scratch, divide + bias
#   at k == last.
# ---------------------------------------------------------------------------
def _agg_kernel(a_ref, h_ref, asrc_ref, adst_ref, b_ref, o_ref,
                acc_ref, den_ref, *,
                negative_slope, num_heads, cout, cp_all, block_k, h_resident):
    k = pl.program_id(1)

    @pl.when(k == 0)
    def _():
        acc_ref[...] = jnp.zeros_like(acc_ref)
        den_ref[...] = jnp.zeros_like(den_ref)

    a_tile = a_ref[...].astype(jnp.float32)          # (TM, TK) exact 0/1 mask

    if h_resident:
        row0 = pl.multiple_of(k * block_k, block_k)
        h_tile = h_ref[pl.ds(row0, block_k), :]      # (TK, Cp) bf16, VMEM-resident
    else:
        h_tile = h_ref[...]                          # streamed per k tile

    asrc = asrc_ref[...]                             # (TM, heads) f32
    adst = adst_ref[...]                             # (heads, TK) f32

    tm = a_tile.shape[0]
    num_blocks = []
    den_blocks = []
    for l in range(num_heads):
        e = asrc[:, l:l + 1] + adst[l:l + 1, :]                   # (TM, TK)
        e = jnp.where(e >= 0, e, negative_slope * e)              # LeakyReLU
        s = a_tile * jnp.exp(e)                                   # masked exp scores, f32
        row_sum = jnp.sum(s, axis=1, keepdims=True)               # (TM, 1)
        den_blocks.append(jnp.broadcast_to(row_sum, (tm, cout)))
        num_blocks.append(jnp.dot(s.astype(jnp.bfloat16),
                                  h_tile[:, l * cout:(l + 1) * cout],
                                  preferred_element_type=jnp.float32))
    pad_w = cp_all - num_heads * cout
    if pad_w:
        num_blocks.append(jnp.zeros((tm, pad_w), jnp.float32))
        den_blocks.append(jnp.zeros((tm, pad_w), jnp.float32))

    acc_ref[...] += jnp.concatenate(num_blocks, axis=1)           # (TM, Cp)
    den_ref[...] += jnp.concatenate(den_blocks, axis=1)           # (TM, Cp)

    @pl.when(k == pl.num_programs(1) - 1)
    def _():
        den = den_ref[...] + 0.001
        inv = pl.reciprocal(den, approx=True)      # EUP slot
        inv = inv * (2.0 - den * inv)              # one Newton step -> ~f32 exact
        o_ref[...] = acc_ref[...] * inv + b_ref[...]


def gat_conv(A, X, W, attn, b, *, negative_slope=0.2,
             block_m=256, block_k=256,
             vmem_limit_bytes=32 * 1024 * 1024,
             resident_h_bytes=12 * 1024 * 1024):
    """GATConv forward.
    A:(N,N) adjacency, X:(N,Cin), W:(Cin,Cout,H), attn:(2*Cout,H), b:(H,Cout).
    Returns (N, H, Cout)."""
    N, Cin = X.shape
    cin_w, Cout, num_heads = W.shape
    assert cin_w == Cin
    assert 2 * num_heads <= 128

    f32 = jnp.float32
    cp_all = _round_up(num_heads * Cout, 128)        # head-packed lane width

    # Tile sizes: large tiles amortize per-grid-step overhead; clamp for tiny N
    # and keep >= 2 row tiles when possible (v7x has 2 TensorCores).
    n128 = _round_up(N, 128)
    block_m = min(block_m, n128)
    block_k = min(block_k, n128)
    if n128 // block_m < 2 and block_m > 128:
        block_m = max(128, block_m // 2)

    Nr = _round_up(N, block_m)                       # output-row axis padding
    Nc = _round_up(N, block_k)                       # neighbor (reduction) axis
    Nproj = max(Nr, Nc)

    # A as a bf16 0/1 mask (exact) -> half the dominant HBM stream.
    A_pad = jnp.zeros((Nr, Nc), jnp.bfloat16).at[:N, :N].set(A.astype(jnp.bfloat16))
    X_pad = jnp.zeros((Nproj, Cin), f32).at[:N, :].set(X.astype(f32))

    # Pack heads along lanes: columns [l*Cout:(l+1)*Cout] belong to head l.
    W_all = jnp.zeros((Cin, cp_all), f32).at[:, :num_heads * Cout].set(
        jnp.transpose(W.astype(f32), (0, 2, 1)).reshape(Cin, num_heads * Cout))
    ATT = jnp.zeros((cp_all, 128), f32)              # 128-wide -> lane-dense stores
    for l in range(num_heads):
        ATT = ATT.at[l * Cout:(l + 1) * Cout, l].set(attn[:Cout, l].astype(f32))
        ATT = ATT.at[l * Cout:(l + 1) * Cout, num_heads + l].set(attn[Cout:, l].astype(f32))
    b_pack = jnp.zeros((1, cp_all), f32).at[0, :num_heads * Cout].set(
        b.astype(f32).reshape(num_heads * Cout))

    # ---- Kernel 1: projection + attention logits for all heads ------------
    pbm = min(256, Nproj)
    Hm, logits = pl.pallas_call(
        _proj_kernel,
        out_shape=(jax.ShapeDtypeStruct((Nproj, cp_all), jnp.bfloat16),
                   jax.ShapeDtypeStruct((Nproj, 128), f32)),
        grid=(Nproj // pbm,),
        in_specs=[
            pl.BlockSpec((pbm, Cin), lambda i: (i, 0)),
            pl.BlockSpec((Cin, cp_all), lambda i: (0, 0)),
            pl.BlockSpec((cp_all, 128), lambda i: (0, 0)),
        ],
        out_specs=(
            pl.BlockSpec((pbm, cp_all), lambda i: (i, 0)),
            pl.BlockSpec((pbm, 128), lambda i: (i, 0)),
        ),
        compiler_params=pltpu.CompilerParams(
            dimension_semantics=("parallel",),
            vmem_limit_bytes=vmem_limit_bytes),
    )(X_pad, W_all, ATT)

    a_src = logits[:Nr, :num_heads]                                 # (Nr, heads)
    a_dst = jnp.transpose(logits[:Nc, num_heads:2 * num_heads])     # (heads, Nc)

    n_row = Nr // block_m
    n_col = Nc // block_k

    # Keep H resident in VMEM across the reduction axis when it fits
    # (budget 2x for potential double-buffering); otherwise stream per k tile.
    h_resident = (2 * Nproj * cp_all * 2) <= resident_h_bytes
    if h_resident:
        h_spec = pl.BlockSpec((Nproj, cp_all), lambda i, k: (0, 0))
    else:
        h_spec = pl.BlockSpec((block_k, cp_all), lambda i, k: (k, 0))

    cost = pl.CostEstimate(
        flops=2 * Nr * Nc * Cout * num_heads + 6 * Nr * Nc * num_heads,
        transcendentals=Nr * Nc * num_heads,
        bytes_accessed=(2 * Nr * Nc
                        + 2 * Nc * cp_all * (1 if h_resident else n_row)
                        + 4 * Nr * cp_all
                        + 4 * (Nr + Nc) * num_heads),
    )

    # ---- Kernel 2: fused multi-head aggregation ----------------------------
    out = pl.pallas_call(
        functools.partial(_agg_kernel, negative_slope=negative_slope,
                          num_heads=num_heads, cout=Cout, cp_all=cp_all,
                          block_k=block_k, h_resident=h_resident),
        out_shape=jax.ShapeDtypeStruct((Nr, cp_all), f32),
        grid_spec=pltpu.PrefetchScalarGridSpec(
            num_scalar_prefetch=0,
            grid=(n_row, n_col),
            in_specs=[
                pl.BlockSpec((block_m, block_k), lambda i, k: (i, k)),    # A tile (bf16)
                h_spec,                                                   # H (bf16)
                pl.BlockSpec((block_m, num_heads), lambda i, k: (i, 0)),  # a_src
                pl.BlockSpec((num_heads, block_k), lambda i, k: (0, k)),  # a_dst
                pl.BlockSpec((1, cp_all), lambda i, k: (0, 0)),           # packed bias
            ],
            out_specs=pl.BlockSpec((block_m, cp_all), lambda i, k: (i, 0)),
            scratch_shapes=[
                pltpu.VMEM((block_m, cp_all), f32),   # numerator accumulator
                pltpu.VMEM((block_m, cp_all), f32),   # denominator (per-head, wide)
            ],
        ),
        compiler_params=pltpu.CompilerParams(
            dimension_semantics=("parallel", "arbitrary"),
            vmem_limit_bytes=vmem_limit_bytes),
        cost_estimate=cost,
    )(A_pad, Hm, a_src, a_dst, b_pack)

    # Un-pack heads from lanes: (Nr, cp_all) -> (N, heads, Cout).
    return out[:N, :num_heads * Cout].reshape(N, num_heads, Cout)


if __name__ == "__main__":
    def reference(A, X, W, attn, b, ns):
        hp = jax.lax.Precision.HIGHEST
        Cout = W.shape[1]
        H = jnp.einsum('ik,kjl->ijl', X, W, precision=hp)                # (N, Cout, heads)
        a0 = jnp.einsum('ijk,jk->ik', H, attn[:Cout, :], precision=hp)   # (N, heads)
        a1 = jnp.einsum('ijk,jk->ik', H, attn[Cout:, :], precision=hp)   # (N, heads)
        e = a0[:, None, :] + a1[None, :, :]
        e = jnp.where(e >= 0, e, ns * e)
        S = A[:, :, None] * jnp.exp(e)
        d = jnp.sum(S, axis=1) + 0.001
        Sn = S / d[:, None, :]
        return jnp.einsum('ikl,kjl->ilj', Sn, H, precision=hp) + b       # (N, heads, Cout)

    ns = 0.2
    key = jax.random.PRNGKey(0)

    # config 1: 4 heads x 32 features -> exactly 128 packed lanes, multi-tile
    #           reduction (exercises the k-accumulation + resident-H slicing).
    # config 2: 1 head, N not 128-aligned -> exercises row/col/lane padding.
    for (N, Cin, Cout, heads) in [(512, 32, 32, 4), (200, 16, 32, 1)]:
        key, k_a, k_x, k_w, k_attn, k_b = jax.random.split(key, 6)
        A = (jax.random.uniform(k_a, (N, N)) > 0.7).astype(jnp.float32)
        X = jax.random.normal(k_x, (N, Cin), dtype=jnp.float32)
        W = jax.random.uniform(k_w, (Cin, Cout, heads), dtype=jnp.float32) / 10.0
        attn = jax.random.uniform(k_attn, (2 * Cout, heads), dtype=jnp.float32) / 10.0
        b = jax.random.uniform(k_b, (heads, Cout), dtype=jnp.float32) / 10.0

        out = jax.block_until_ready(gat_conv(A, X, W, attn, b, negative_slope=ns))
        ref = reference(A, X, W, attn, b, ns)

        assert out.shape == (N, heads, Cout), out.shape
        err = float(jnp.max(jnp.abs(out - ref)))
        assert jnp.allclose(out, ref, atol=5e-3, rtol=5e-3), f"max abs err {err}"

    print("KERNEL_OK")
</pallas_src>

<mosaic_0001>
module attributes {stable_mosaic.version = 11 : i64} {
  func.func @_proj_kernel(%arg0: i32, %arg1: memref<256x32xf32, #tpu.memory_space<vmem>>, %arg2: memref<32x128xf32, #tpu.memory_space<vmem>>, %arg3: memref<128x128xf32, #tpu.memory_space<vmem>>, %arg4: memref<256x128xbf16, #tpu.memory_space<vmem>>, %arg5: memref<256x128xf32, #tpu.memory_space<vmem>>) attributes {dimension_semantics = [#tpu.dimension_semantics<parallel>], iteration_bounds = array<i64: 2>, scalar_prefetch = 0 : i64, scratch_operands = 0 : i64, tpu.core_type = #tpu.core_type<tc>, window_params = [{transform_indices = @transform_0, window_bounds = array<i64: 256, 32>}, {pipeline_mode = #tpu.pipeline_mode<synchronous>, transform_indices = @transform_1, window_bounds = array<i64: 32, 128>}, {pipeline_mode = #tpu.pipeline_mode<synchronous>, transform_indices = @transform_2, window_bounds = array<i64: 128, 128>}, {transform_indices = @transform_3, window_bounds = array<i64: 256, 128>}, {transform_indices = @transform_4, window_bounds = array<i64: 256, 128>}]} {
    %c0 = arith.constant 0 : index
    %c0_0 = arith.constant 0 : index
    %0 = vector.load %arg1[%c0, %c0_0] : memref<256x32xf32, #tpu.memory_space<vmem>>, vector<256x32xf32>
    %c0_1 = arith.constant 0 : index
    %c0_2 = arith.constant 0 : index
    %1 = vector.load %arg2[%c0_1, %c0_2] : memref<32x128xf32, #tpu.memory_space<vmem>>, vector<32x128xf32>
    %cst = arith.constant dense<0.000000e+00> : vector<256x128xf32>
    %2 = tpu.matmul %0, %1, %cst {dimension_numbers = #tpu.dot_dimension_numbers<[1], [0], [0], [1], [0, 0, 1, 1], [], []>} : vector<256x32xf32>, vector<32x128xf32>, vector<256x128xf32> -> vector<256x128xf32>
    %c0_3 = arith.constant 0 : index
    %c0_4 = arith.constant 0 : index
    %3 = vector.load %arg3[%c0_3, %c0_4] : memref<128x128xf32, #tpu.memory_space<vmem>>, vector<128x128xf32>
    %cst_5 = arith.constant dense<0.000000e+00> : vector<256x128xf32>
    %4 = tpu.matmul %2, %3, %cst_5 {dimension_numbers = #tpu.dot_dimension_numbers<[1], [0], [0], [1], [0, 0, 1, 1], [], []>} : vector<256x128xf32>, vector<128x128xf32>, vector<256x128xf32> -> vector<256x128xf32>
    %c0_6 = arith.constant 0 : index
    %c0_7 = arith.constant 0 : index
    %5 = vector.load %arg5[%c0_6, %c0_7] : memref<256x128xf32, #tpu.memory_space<vmem>>, vector<256x128xf32>
    tpu.vector_store %arg5[%c0_6, %c0_7], %4 {strides = array<i32>} : memref<256x128xf32, #tpu.memory_space<vmem>>, vector<256x128xf32>,
    %6 = arith.truncf %2 : vector<256x128xf32> to vector<256x128xbf16>
    %c0_8 = arith.constant 0 : index
    %c0_9 = arith.constant 0 : index
    %7 = vector.load %arg4[%c0_8, %c0_9] : memref<256x128xbf16, #tpu.memory_space<vmem>>, vector<256x128xbf16>
    tpu.vector_store %arg4[%c0_8, %c0_9], %6 {strides = array<i32>} : memref<256x128xbf16, #tpu.memory_space<vmem>>, vector<256x128xbf16>,
    return
  }
  func.func @transform_0(%arg0: i32) -> (i32, i32) {
    %c0_i32 = arith.constant 0 : i32
    %c0_i32_0 = arith.constant 0 : i32
    return %arg0, %c0_i32 : i32, i32
  }
  func.func @transform_1(%arg0: i32) -> (i32, i32) {
    %c0_i32 = arith.constant 0 : i32
    %c0_i32_0 = arith.constant 0 : i32
    %c0_i32_1 = arith.constant 0 : i32
    return %c0_i32, %c0_i32_0 : i32, i32
  }
  func.func @transform_2(%arg0: i32) -> (i32, i32) {
    %c0_i32 = arith.constant 0 : i32
    %c0_i32_0 = arith.constant 0 : i32
    %c0_i32_1 = arith.constant 0 : i32
    return %c0_i32, %c0_i32_0 : i32, i32
  }
  func.func @transform_3(%arg0: i32) -> (i32, i32) {
    %c0_i32 = arith.constant 0 : i32
    %c0_i32_0 = arith.constant 0 : i32
    return %arg0, %c0_i32 : i32, i32
  }
  func.func @transform_4(%arg0: i32) -> (i32, i32) {
    %c0_i32 = arith.constant 0 : i32
    %c0_i32_0 = arith.constant 0 : i32
    return %arg0, %c0_i32 : i32, i32
  }
}

</mosaic_0001>

<bundles_post_ra>
// kernel: tpu_custom_call.1
= control target key start
LH: loop header
LB: loop body
LE: loop exit
PB: predicated region body
PF: predicated region fallthrough
CT: control target
= control target key end

     0   :  { %10 = vsyncpa [#allocation3], 0  ;;  %s2079_s0 = inlined_call_operand.vmem [shape: f32[512,32], index: 0, kind: input, shape index: {}]   ;;  %s2080_s1 = inlined_call_operand.vmem [shape: f32[32,128], index: 1, kind: input, shape index: {}]   ;;  %s2081_s2 = inlined_call_operand.vmem [shape: f32[128,128], index: 2, kind: input, shape index: {}]   ;;  %s2082_s3 = inlined_call_operand.hbm [shape: bf16[512,128], index: 3, kind: output, shape index: {0}]   ;;  %s2083_s4 = inlined_call_operand.hbm [shape: f32[512,128], index: 4, kind: output, shape index: {1}]  }
   0x1   :  { %12 = vsyncpa [#allocation3 + $0x1], 0 }
   0x2   :  { %13 = vsyncpa [#allocation5], 0 }
   0x3   :  { %15 = vsyncpa [#allocation5 + $0x1], 0  ;;  %s1763_s15 = smov 0   ;;  %s1765_s16 = smov 0  }
   0x4   :  { %s1767_s17 = smov 0   ;;  %s1769_s18 = smov 0  }
   0x5 LB: > { %s1784_s19 = sadd.s32 4294967295, %s1730_s18   ;;  %s1131_s20 = sadd.s32 4294967294, %s1730_s18   ;;  %s1730_s18 = sphi %s1769_s18, %s2089_s18   ;;  %s1726_s17 = sphi %s1767_s17, %s2088_s17   ;;  %s1722_s16 = sphi %s1765_s16, %s2087_s16   ;;  %s1718_s15 = sphi %s1763_s15, %s2086_s15  }
   0x6   : > { %s1788_s21 = sadd.s32 1, %s1730_s18   ;;  %s96_s22 = sadd.s32 1, %s1726_s17 }
   0x7   : > { %s93_s23 = ssub.s32 %s1730_s18, %s1788_s21  ;;  %p106_p0 = scmp.ne.s32.totalorder %s1726_s17, %s1722_s16 }
   0x8   : > { %p94_p1 = scmp.eq.s32.totalorder %s93_s23, 0  ;;  %p107_p2 = scmp.eq.s32.totalorder %s1784_s19, 1 }
   0x9   : > { %p112_p3 = scmp.ne.s32.totalorder %s1722_s16, %s1718_s15  ;;  %p113_p4 = scmp.eq.s32.totalorder %s1131_s20, 1 }
   0xa   : > { %s1799_s24 = scalar_select %p94_p1, %s1726_s17, %s96_s22  }
   0xb   : > { %p1801_p5 = por %p107_p2, %p106_p0  ;;  %p1805_p6 = por %p113_p4, %p112_p3 }
   0xc   : > { %p1134_p7 = scmp.ge.s32.totalorder %s1730_s18, 1  ;;  %p172_p8 = scmp.lt.s32.totalorder %s1730_s18, 3 }
   0xe   : > { %p173_p9 = pnand %p1134_p7, %p172_p8 }
   0xf   : > { %s1137_s5 = sshll.u32 (!%p173_p9), %s1784_s19, 5  ;;  %s1942_s13 = sand.u32 (!%p173_p9), 1, %s1722_s16  }
  0x10   : > { %176 = sbr.rel (%p173_p9) target bundleno = 495 (0x1ef), region = 32  ;;  %p204_p10 = scmp.lt.s32.totalorder (!%p173_p9), %s1137_s5, 63 }
  0x11   : > { %s1243_s20 = sshll.u32 (!%p173_p9), %s1784_s19, 11  ;;  %s1003_s30 = scalar_lea.sflag (!%p173_p9), [#allocation3], %s1942_s13 }
  0x12   : > { %s1968_s29 = scalar_lea.hbm (!%p173_p9), %s2082_s3, %s1243_s20  ;;  %s1732_s6 = smov (!%p173_p9), [#allocation2]  }
  0x13   : > { %s1644_s7 = sshll.u32 (!%p173_p9), %s1732_s6, 4  ;;  %s1645_s7 = int_to_ptr.vmem [resolvable:$false] %s1644_s7 }
  0x14   : > { %s1646_s8 = scalar_lea.vmem (!%p173_p9), %s1645_s7, 4096 }
  0x15   : > { %v246_v0 = vld [vmem:[%s2080_s1 + $0x18] sm:$0xff]  ;;  %v245_v1 = vld [vmem:[%s2080_s1 + $0x10] sm:$0xff]  ;;  %v244_v3 = vld [vmem:[%s2080_s1 + $0x8] sm:$0xff]  ;;  %s2091_s5 = smov (!%p204_p10, %s1137_s5), 63  ;;  %vm247_vm0 = vcmask 261120  }
  0x16   : > { %1424 = vmatprep.subr.mxu0 %v246_v0  ;;  %v584_v2 = vld [vmem:[%s2081_s2 + $0x78] sm:$0xff]  ;;  %v583_v4 = vld [vmem:[%s2081_s2 + $0x70] sm:$0xff]  ;;  %v243_v5 = vld [vmem:[%s2080_s1] sm:$0xff]  ;;  %s1138_s14 = sshll.u32 %s2091_s5, 3 }
  0x17   : > { %1425 = vmatpush3.msra.mxu0 %v246_v0  ;;  %1560 = vmatprep.subr.mxu1 %v584_v2  ;;  %v582_v6 = vld [vmem:[%s2081_s2 + $0x68] sm:$0xff]  ;;  %s1836_s28 = scalar_lea.vmem %s2079_s0, %s1138_s14  ;;  %v581_v11 = vld [vmem:[%s2081_s2 + $0x60] sm:$0xff]  ;;  %v580_v14 = vld [vmem:[%s2081_s2 + $0x58] sm:$0xff] }
  0x18   : > { %1426 = vmatprep.subr.mxu0 %v245_v1  ;;  %1576 = vmatpush3.msra.mxu1 %v584_v2  ;;  %v211_v7 = vld [vmem:[%s1836_s28] sm:$0xff]  ;;  %v212_v8 = vld [vmem:[%s1836_s28 + $0x8] sm:$0xff]  ;;  %v213_v9 = vld [vmem:[%s1836_s28 + $0x10] sm:$0xff] }
  0x19   : > { %1427 = vmatpush3.msra.mxu0 %v245_v1  ;;  %1561 = vmatprep.subr.mxu1 %v583_v4  ;;  %v214_v10 = vld [vmem:[%s1836_s28 + $0x18] sm:$0xff]  ;;  %v215_v12 = vld [vmem:[%s1836_s28 + $0x20] sm:$0xff]  ;;  %v216_v13 = vld [vmem:[%s1836_s28 + $0x28] sm:$0xff] }
  0x1a   : > { %1428 = vmatprep.subr.mxu0 %v244_v3  ;;  %1577 = vmatpush3.msra.mxu1 %v583_v4  ;;  %v217_v15 = vld [vmem:[%s1836_s28 + $0x30] sm:$0xff]  ;;  %v218_v17 = vld [vmem:[%s1836_s28 + $0x38] sm:$0xff]  ;;  %v578_v18 = vld [vmem:[%s2081_s2 + $0x48] sm:$0xff] }
  0x1b   : > { %1429 = vmatpush3.msra.mxu0 %v244_v3  ;;  %1562 = vmatprep.subr.mxu1 %v582_v6  ;;  %v579_v16 = vld [vmem:[%s2081_s2 + $0x50] sm:$0xff]  ;;  %v219_v19 = vld [vmem:[%s1836_s28 + $0x40] sm:$0xff]  ;;  %v220_v21 = vld [vmem:[%s1836_s28 + $0x48] sm:$0xff] }
  0x1c   : > { %1430 = vmatprep.subr.mxu0 %v243_v5  ;;  %1578 = vmatpush3.msra.mxu1 %v582_v6  ;;  %v577_v20 = vld [vmem:[%s2081_s2 + $0x40] sm:$0xff]  ;;  %v576_v22 = vld [vmem:[%s2081_s2 + $0x38] sm:$0xff]  ;;  %v221_v23 = vld [vmem:[%s1836_s28 + $0x50] sm:$0xff] }
  0x1d   : > { %1431 = vmatpush3.msra.mxu0 %v243_v5  ;;  %1432 = vmatprep.mubr.msk.f32.mxu0 %vm247_vm0, %v211_v7  ;;  %v575_v24 = vld [vmem:[%s2081_s2 + $0x30] sm:$0xff]  ;;  %v222_v25 = vld [vmem:[%s1836_s28 + $0x58] sm:$0xff]  ;;  %v574_v26 = vld [vmem:[%s2081_s2 + $0x28] sm:$0xff] }
  0x1e   : > { %1433 = vmatmul.mubr.msk.f32.vlgmr.msra.gmra.mxu0 %vm247_vm0, %v212_v8  ;;  %1480 = vmatprep.subr.mxu0 %v584_v2  ;;  %v223_v27 = vld [vmem:[%s1836_s28 + $0x60] sm:$0xff]  ;;  %v224_v29 = vld [vmem:[%s1836_s28 + $0x68] sm:$0xff]  ;;  %v572_v30 = vld [vmem:[%s2081_s2 + $0x18] sm:$0xff] }
  0x1f   : > { %1435 = vmatprep.mubr.msk.f32.mxu0 %vm247_vm0, %v213_v9  ;;  %1481 = vmatpush3.msra.mxu0 %v584_v2  ;;  %v573_v28 = vld [vmem:[%s2081_s2 + $0x20] sm:$0xff]  ;;  %v225_v31 = vld [vmem:[%s1836_s28 + $0x70] sm:$0xff]  ;;  %v226_v33 = vld [vmem:[%s1836_s28 + $0x78] sm:$0xff] }
  0x20   : > { %1482 = vmatprep.subr.mxu0 %v583_v4  ;;  %1563 = vmatprep.subr.mxu1 %v581_v11  ;;  %v571_v32 = vld [vmem:[%s2081_s2 + $0x10] sm:$0xff]  ;;  %v227_v34 = vld [vmem:[%s1836_s28 + $0x80] sm:$0xff]  ;;  %v228_v35 = vld [vmem:[%s1836_s28 + $0x88] sm:$0xff] }
  0x21   : > { %1483 = vmatpush3.msra.mxu0 %v583_v4  ;;  %1579 = vmatpush3.msra.mxu1 %v581_v11  ;;  %v229_v36 = vld [vmem:[%s1836_s28 + $0x90] sm:$0xff]  ;;  %v230_v37 = vld [vmem:[%s1836_s28 + $0x98] sm:$0xff]  ;;  %v231_v38 = vld [vmem:[%s1836_s28 + $0xa0] sm:$0xff] }
  0x22   : > { %1436 = vmatmul.mubr.msk.f32.gmra.mxu0 %vm247_vm0, %v214_v10  ;;  %1484 = vmatprep.subr.mxu0 %v582_v6  ;;  %v232_v39 = vld [vmem:[%s1836_s28 + $0xa8] sm:$0xff]  ;;  %v233_v40 = vld [vmem:[%s1836_s28 + $0xb0] sm:$0xff]  ;;  %v234_v41 = vld [vmem:[%s1836_s28 + $0xb8] sm:$0xff] }
  0x23   : > { %1438 = vmatprep.mubr.msk.f32.mxu0 %vm247_vm0, %v215_v12  ;;  %1485 = vmatpush3.msra.mxu0 %v582_v6  ;;  %v235_v42 = vld [vmem:[%s1836_s28 + $0xc0] sm:$0xff]  ;;  %v236_v43 = vld [vmem:[%s1836_s28 + $0xc8] sm:$0xff]  ;;  %v237_v44 = vld [vmem:[%s1836_s28 + $0xd0] sm:$0xff] }
  0x24   : > { %1486 = vmatprep.subr.mxu0 %v581_v11  ;;  %1564 = vmatprep.subr.mxu1 %v580_v14  ;;  %v238_v45 = vld [vmem:[%s1836_s28 + $0xd8] sm:$0xff]  ;;  %v239_v46 = vld [vmem:[%s1836_s28 + $0xe0] sm:$0xff]  ;;  %v240_v47 = vld [vmem:[%s1836_s28 + $0xe8] sm:$0xff] }
  0x25   : > { %1487 = vmatpush3.msra.mxu0 %v581_v11  ;;  %1580 = vmatpush3.msra.mxu1 %v580_v14  ;;  %v241_v48 = vld [vmem:[%s1836_s28 + $0xf0] sm:$0xff]  ;;  %v242_v49 = vld [vmem:[%s1836_s28 + $0xf8] sm:$0xff]  ;;  %v570_v50 = vld [vmem:[%s2081_s2 + $0x8] sm:$0xff]  ;;  %s1135_s28 = sshll.u32 %s1942_s13, 7 }
  0x26   : > { %1439 = vmatmul.mubr.msk.f32.gmra.mxu0 %vm247_vm0, %v216_v13  ;;  %1488 = vmatprep.subr.mxu0 %v580_v14  ;;  %v569_v51 = vld [vmem:[%s2081_s2] sm:$0xff]  ;;  %s1945_s14 = scalar_lea.vmem [#allocation2], %s1135_s28 }
  0x27   : > { %1441 = vmatprep.mubr.msk.f32.mxu0 %vm247_vm0, %v217_v15  ;;  %1489 = vmatpush3.msra.mxu0 %v580_v14  ;;  %s1021_s22 = sshll.u32 %s1945_s14, 4  ;;  %s1970_s22 = int_to_ptr.vmem [resolvable:$true] %s1021_s22 }
  0x28   : > { %1490 = vmatprep.subr.mxu0 %v579_v16  ;;  %1565 = vmatprep.subr.mxu1 %v579_v16  ;;  %s1640_s5 = scalar_lea.vmem %s1970_s22, 2048  ;;  %p1647_p0 = scmp.lt.s32.totalorder %s1970_s22, %s1645_s7 }
  0x29   : > { %1491 = vmatpush3.msra.mxu0 %v579_v16  ;;  %1581 = vmatpush3.msra.mxu1 %v579_v16  ;;  %p1641_p11 = scmp.ne.s32.totalorder %s1970_s22, %s1640_s5  ;;  %p1648_p1 = scmp.lt.s32.totalorder %s1646_s8, %s1640_s5 }
  0x2a   : > { %1442 = vmatmul.mubr.msk.f32.gmra.mxu0 %vm247_vm0, %v218_v17  ;;  %1492 = vmatprep.subr.mxu0 %v578_v18 }
  0x2b   : > { %1444 = vmatprep.mubr.msk.f32.mxu0 %vm247_vm0, %v219_v19  ;;  %1493 = vmatpush3.msra.mxu0 %v578_v18  ;;  %p1642_p12 = pnand %p1641_p11, %p1801_p5  ;;  %p1649_p2 = por %p1648_p1, %p1647_p0 }
  0x2c   : > { %1494 = vmatprep.subr.mxu0 %v577_v20  ;;  %1566 = vmatprep.subr.mxu1 %v578_v18 }
  0x2d   : > { %1495 = vmatpush3.msra.mxu0 %v577_v20  ;;  %1582 = vmatpush3.msra.mxu1 %v578_v18  ;;  %p1643_p13 = pneg %p1642_p12 }
  0x2e   : > { %1445 = vmatmul.mubr.msk.f32.gmra.mxu0 %vm247_vm0, %v220_v21  ;;  %1496 = vmatprep.subr.mxu0 %v576_v22 }
  0x2f   : > { %1447 = vmatprep.mubr.msk.f32.mxu0 %vm247_vm0, %v221_v23  ;;  %1497 = vmatpush3.msra.mxu0 %v576_v22  ;;  %p1650_p3 = pnand %p1649_p2, %p1643_p13 }
  0x30   : > { %1498 = vmatprep.subr.mxu0 %v575_v24  ;;  %1567 = vmatprep.subr.mxu1 %v577_v20 }
  0x31   : > { %1499 = vmatpush3.msra.mxu0 %v575_v24  ;;  %1583 = vmatpush3.msra.mxu1 %v577_v20 }
  0x32   : > { %1448 = vmatmul.mubr.msk.f32.gmra.mxu0 %vm247_vm0, %v222_v25  ;;  %1500 = vmatprep.subr.mxu0 %v574_v26 }
  0x33   : > { %1450 = vmatprep.mubr.msk.f32.mxu0 %vm247_vm0, %v223_v27  ;;  %1501 = vmatpush3.msra.mxu0 %v574_v26 }
  0x34   : > { %1502 = vmatprep.subr.mxu0 %v573_v28  ;;  %1568 = vmatprep.subr.mxu1 %v576_v22 }
  0x35   : > { %1503 = vmatpush3.msra.mxu0 %v573_v28  ;;  %1584 = vmatpush3.msra.mxu1 %v576_v22 }
  0x36   : > { %1451 = vmatmul.mubr.msk.f32.gmra.mxu0 %vm247_vm0, %v224_v29  ;;  %1504 = vmatprep.subr.mxu0 %v572_v30 }
  0x37   : > { %1453 = vmatprep.mubr.msk.f32.mxu0 %vm247_vm0, %v225_v31  ;;  %1505 = vmatpush3.msra.mxu0 %v572_v30 }
  0x38   : > { %1506 = vmatprep.subr.mxu0 %v571_v32  ;;  %1569 = vmatprep.subr.mxu1 %v575_v24 }
  0x39   : > { %1507 = vmatpush3.msra.mxu0 %v571_v32  ;;  %1585 = vmatpush3.msra.mxu1 %v575_v24 }
  0x3a   : > { %1454 = vmatmul.mubr.msk.f32.gmra.mxu0 %vm247_vm0, %v226_v33  ;;  %1570 = vmatprep.subr.mxu1 %v574_v26 }
  0x3b   : > { %1456 = vmatprep.mubr.msk.f32.mxu0 %vm247_vm0, %v227_v34  ;;  %1586 = vmatpush3.msra.mxu1 %v574_v26 }
  0x3c   : > { %1571 = vmatprep.subr.mxu1 %v573_v28  ;;  %1508 = vmatprep.subr.mxu0 %v570_v50 }
  0x3d   : > { %1587 = vmatpush3.msra.mxu1 %v573_v28  ;;  %1509 = vmatpush3.msra.mxu0 %v570_v50 }
  0x3e   : > { %1457 = vmatmul.mubr.msk.f32.gmra.mxu0 %vm247_vm0, %v228_v35  ;;  %1572 = vmatprep.subr.mxu1 %v572_v30 }
  0x3f   : > { %1459 = vmatprep.mubr.msk.f32.mxu0 %vm247_vm0, %v229_v36  ;;  %1588 = vmatpush3.msra.mxu1 %v572_v30 }
  0x40   : > { %1573 = vmatprep.subr.mxu1 %v571_v32  ;;  %1510 = vmatprep.subr.mxu0 %v569_v51 }
  0x41   : > { %1589 = vmatpush3.msra.mxu1 %v571_v32  ;;  %1511 = vmatpush3.msra.mxu0 %v569_v51 }
  0x42   : > { %1460 = vmatmul.mubr.msk.f32.gmra.mxu0 %vm247_vm0, %v230_v37  ;;  %1574 = vmatprep.subr.mxu1 %v570_v50 }
  0x43   : > { %1462 = vmatprep.mubr.msk.f32.mxu0 %vm247_vm0, %v231_v38  ;;  %1590 = vmatpush3.msra.mxu1 %v570_v50 }
  0x44   : > { %1575 = vmatprep.subr.mxu1 %v569_v51 }
  0x45   : > { %1591 = vmatpush3.msra.mxu1 %v569_v51 }
  0x46   : > { %1463 = vmatmul.mubr.msk.f32.gmra.mxu0 %vm247_vm0, %v232_v39 }
  0x47   : > { %1465 = vmatprep.mubr.msk.f32.mxu0 %vm247_vm0, %v233_v40 }
  0x4a   : > { %1466 = vmatmul.mubr.msk.f32.gmra.mxu0 %vm247_vm0, %v234_v41 }
  0x4b   : > { %1468 = vmatprep.mubr.msk.f32.mxu0 %vm247_vm0, %v235_v42 }
  0x4e   : > { %1469 = vmatmul.mubr.msk.f32.gmra.mxu0 %vm247_vm0, %v236_v43 }
  0x4f   : > { %1471 = vmatprep.mubr.msk.f32.mxu0 %vm247_vm0, %v237_v44 }
  0x52   : > { %1472 = vmatmul.mubr.msk.f32.gmra.mxu0 %vm247_vm0, %v238_v45 }
  0x53   : > { %1474 = vmatprep.mubr.msk.f32.mxu0 %vm247_vm0, %v239_v46 }
  0x56   : > { %1475 = vmatmul.mubr.msk.f32.gmra.mxu0 %vm247_vm0, %v240_v47 }
  0x57   : > { %1477 = vmatprep.mubr.msk.f32.mxu0 %vm247_vm0, %v241_v48 }
  0x5a   : > { %1478 = vmatmul.mubr.msk.f32.gmra.mxu0 %vm247_vm0, %v242_v49 }
  0xde   : > { %v1434_v52 = vpop.f32.mrf.mxu0 }
  0xe0   : > { %v410_v53 = vpop.f32.mrf.mxu0 }
  0xe1   : > { %v1248_v54 = vpack.c.bf16 %v1434_v52, %v410_v53  ;;  %1512 = vmatprep.mubr.f32.mxu0 %v410_v53 }
  0xe2   : > { %v1437_v55 = vpop.f32.mrf.mxu0  ;;  %1513 = vmatmul.mubr.f32.vlgmr.msra.gmra.mxu0 %v1434_v52 }
  0xe3   : > { %1249 = vst [vmem:[%s1945_s14] sm:$0xff] %v1248_v54  }
  0xe4   : > { %v420_v56 = vpop.f32.mrf.mxu0 }
  0xe5   : > { %v1253_v57 = vpack.c.bf16 %v1437_v55, %v420_v56  ;;  %1515 = vmatprep.mubr.f32.mxu0 %v420_v56 }
  0xe6   : > { %v1440_v58 = vpop.f32.mrf.mxu0  ;;  %1516 = vmatmul.mubr.f32.gmra.mxu0 %v1437_v55 }
  0xe7   : > { %1325 = vst [vmem:[%s1945_s14 + $0x8] sm:$0xff] %v1253_v57  }
  0xe8   : > { %v430_v59 = vpop.f32.mrf.mxu0 }
  0xe9   : > { %v1258_v60 = vpack.c.bf16 %v1440_v58, %v430_v59  ;;  %1518 = vmatprep.mubr.f32.mxu0 %v430_v59 }
  0xea   : > { %v1443_v61 = vpop.f32.mrf.mxu0  ;;  %1519 = vmatmul.mubr.f32.gmra.mxu0 %v1440_v58 }
  0xeb   : > { %1326 = vst [vmem:[%s1945_s14 + $0x10] sm:$0xff] %v1258_v60  }
  0xec   : > { %v440_v62 = vpop.f32.mrf.mxu0 }
  0xed   : > { %v1263_v63 = vpack.c.bf16 %v1443_v61, %v440_v62  ;;  %1521 = vmatprep.mubr.f32.mxu1 %v440_v62 }
  0xee   : > { %v1446_v0 = vpop.f32.mrf.mxu0  ;;  %1522 = vmatmul.mubr.f32.vlgmr.msra.gmra.mxu1 %v1443_v61 }
  0xef   : > { %1327 = vst [vmem:[%s1945_s14 + $0x18] sm:$0xff] %v1263_v63  }
  0xf0   : > { %v450_v1 = vpop.f32.mrf.mxu0 }
  0xf1   : > { %v1268_v2 = vpack.c.bf16 %v1446_v0, %v450_v1  ;;  %1524 = vmatprep.mubr.f32.mxu1 %v450_v1 }
  0xf2   : > { %v1449_v3 = vpop.f32.mrf.mxu0  ;;  %1525 = vmatmul.mubr.f32.gmra.mxu1 %v1446_v0 }
  0xf3   : > { %1328 = vst [vmem:[%s1945_s14 + $0x20] sm:$0xff] %v1268_v2  }
  0xf4   : > { %v460_v4 = vpop.f32.mrf.mxu0 }
  0xf5   : > { %v1273_v5 = vpack.c.bf16 %v1449_v3, %v460_v4  ;;  %1527 = vmatprep.mubr.f32.mxu1 %v460_v4 }
  0xf6   : > { %v1452_v6 = vpop.f32.mrf.mxu0  ;;  %1528 = vmatmul.mubr.f32.gmra.mxu1 %v1449_v3 }
  0xf7   : > { %1329 = vst [vmem:[%s1945_s14 + $0x28] sm:$0xff] %v1273_v5  }
  0xf8   : > { %v470_v7 = vpop.f32.mrf.mxu0 }
  0xf9   : > { %v1278_v8 = vpack.c.bf16 %v1452_v6, %v470_v7  ;;  %1530 = vmatprep.mubr.f32.mxu1 %v470_v7 }
  0xfa   : > { %v1455_v9 = vpop.f32.mrf.mxu0  ;;  %1531 = vmatmul.mubr.f32.gmra.mxu1 %v1452_v6 }
  0xfb   : > { %1330 = vst [vmem:[%s1945_s14 + $0x30] sm:$0xff] %v1278_v8  }
  0xfc   : > { %v480_v10 = vpop.f32.mrf.mxu0 }
  0xfd   : > { %v1283_v11 = vpack.c.bf16 %v1455_v9, %v480_v10  ;;  %1533 = vmatprep.mubr.f32.mxu1 %v480_v10 }
  0xfe   : > { %v1458_v12 = vpop.f32.mrf.mxu0  ;;  %1534 = vmatmul.mubr.f32.gmra.mxu1 %v1455_v9 }
  0xff   : > { %1331 = vst [vmem:[%s1945_s14 + $0x38] sm:$0xff] %v1283_v11  }
 0x100   : > { %v490_v13 = vpop.f32.mrf.mxu0 }
 0x101   : > { %v1288_v14 = vpack.c.bf16 %v1458_v12, %v490_v13  ;;  %1536 = vmatprep.mubr.f32.mxu1 %v490_v13 }
 0x102   : > { %v1461_v15 = vpop.f32.mrf.mxu0  ;;  %1537 = vmatmul.mubr.f32.gmra.mxu1 %v1458_v12 }
 0x103   : > { %1332 = vst [vmem:[%s1945_s14 + $0x40] sm:$0xff] %v1288_v14  }
 0x104   : > { %v500_v16 = vpop.f32.mrf.mxu0 }
 0x105   : > { %v1293_v17 = vpack.c.bf16 %v1461_v15, %v500_v16  ;;  %1539 = vmatprep.mubr.f32.mxu1 %v500_v16 }
 0x106   : > { %v1464_v18 = vpop.f32.mrf.mxu0  ;;  %1540 = vmatmul.mubr.f32.gmra.mxu1 %v1461_v15 }
 0x107   : > { %1333 = vst [vmem:[%s1945_s14 + $0x48] sm:$0xff] %v1293_v17  }
 0x108   : > { %v510_v19 = vpop.f32.mrf.mxu0 }
 0x109   : > { %v1298_v20 = vpack.c.bf16 %v1464_v18, %v510_v19  ;;  %1542 = vmatprep.mubr.f32.mxu1 %v510_v19 }
 0x10a   : > { %v1467_v21 = vpop.f32.mrf.mxu0  ;;  %1543 = vmatmul.mubr.f32.gmra.mxu1 %v1464_v18 }
 0x10b   : > { %1334 = vst [vmem:[%s1945_s14 + $0x50] sm:$0xff] %v1298_v20  }
 0x10c   : > { %v520_v22 = vpop.f32.mrf.mxu0 }
 0x10d   : > { %v1303_v23 = vpack.c.bf16 %v1467_v21, %v520_v22  ;;  %1545 = vmatprep.mubr.f32.mxu1 %v520_v22 }
 0x10e   : > { %v1470_v24 = vpop.f32.mrf.mxu0  ;;  %1546 = vmatmul.mubr.f32.gmra.mxu1 %v1467_v21 }
 0x10f   : > { %1335 = vst [vmem:[%s1945_s14 + $0x58] sm:$0xff] %v1303_v23  }
 0x110   : > { %v530_v25 = vpop.f32.mrf.mxu0 }
 0x111   : > { %v1308_v26 = vpack.c.bf16 %v1470_v24, %v530_v25  ;;  %1548 = vmatprep.mubr.f32.mxu1 %v530_v25 }
 0x112   : > { %v1473_v27 = vpop.f32.mrf.mxu0  ;;  %1549 = vmatmul.mubr.f32.gmra.mxu1 %v1470_v24 }
 0x113   : > { %1336 = vst [vmem:[%s1945_s14 + $0x60] sm:$0xff] %v1308_v26  }
 0x114   : > { %v540_v28 = vpop.f32.mrf.mxu0 }
 0x115   : > { %v1313_v29 = vpack.c.bf16 %v1473_v27, %v540_v28  ;;  %1551 = vmatprep.mubr.f32.mxu1 %v540_v28 }
 0x116   : > { %v1476_v30 = vpop.f32.mrf.mxu0  ;;  %1552 = vmatmul.mubr.f32.gmra.mxu1 %v1473_v27 }
 0x117   : > { %1337 = vst [vmem:[%s1945_s14 + $0x68] sm:$0xff] %v1313_v29  }
 0x118   : > { %v550_v31 = vpop.f32.mrf.mxu0 }
 0x119   : > { %v1318_v32 = vpack.c.bf16 %v1476_v30, %v550_v31  ;;  %1554 = vmatprep.mubr.f32.mxu1 %v550_v31 }
 0x11a   : > { %v1479_v33 = vpop.f32.mrf.mxu0  ;;  %1555 = vmatmul.mubr.f32.gmra.mxu1 %v1476_v30 }
 0x11b   : > { %1338 = vst [vmem:[%s1945_s14 + $0x70] sm:$0xff] %v1318_v32  }
 0x11c   : > { %v560_v34 = vpop.f32.mrf.mxu0 }
 0x11d   : > { %v1323_v35 = vpack.c.bf16 %v1479_v33, %v560_v34  ;;  %1557 = vmatprep.mubr.f32.mxu1 %v560_v34 }
 0x11e   : > { %1558 = vmatmul.mubr.f32.gmra.mxu1 %v1479_v33 }
 0x11f   : > { %1339 = vst [vmem:[%s1945_s14 + $0x78] sm:$0xff] %v1323_v35  }
 0x120   : > { %1653 = shalt.err (!%p1650_p3)
}
 0x121   : > { %s1654_s9 = scalar_lea.hbm %s1968_s29, 2048  ;;  %s1658_s12 = scalar_lea.hbm %s2082_s3, 4096 }
 0x122   : > { %p1655_p4 = scmp.ne.s32.totalorder %s1968_s29, %s1654_s9  ;;  %p1659_p9 = scmp.lt.s32.totalorder %s1968_s29, %s2082_s3 }
 0x123   : > { %p1660_p10 = scmp.lt.s32.totalorder %s1658_s12, %s1654_s9 }
 0x124   : > { %p1656_p7 = pnand %p1655_p4, %p1801_p5 }
 0x125   : > { %p1661_p11 = por %p1660_p10, %p1659_p9 }
 0x126   : > { %p1657_p8 = pneg %p1656_p7 }
 0x128   : > { %p1662_p12 = pnand %p1661_p11, %p1657_p8 }
 0x12a   : > { %1665 = shalt.err (!%p1662_p12)
}
 0x12b   : > { %s1733_s20 = smov 64   ;;  %s1734_s23 = smov 4  }
 0x12c   : > { %1592 = dma.vmem_to_hbm [thread:$0]  (%p1801_p5), %s1970_s22, 2048, %s1968_s29, %s1003_s30, %s1733_s20, %s1733_s20, %s1734_s23  }
 0x12d   : > { %s1136_s27 = sshll.u32 %s1942_s13, 8  ;;  %s1244_s22 = sshll.u32 %s1784_s19, 12 }
 0x12e   : > { %s1996_s5 = scalar_lea.vmem [#allocation4], %s1136_s27  ;;  %s2033_s7 = scalar_lea.hbm %s2083_s4, %s1244_s22 }
 0x12f   : > { %s1037_s29 = sshll.u32 %s1996_s5, 4  ;;  %s1008_s8 = scalar_lea.sflag [#allocation5], %s1942_s13  ;;  %s2035_s29 = int_to_ptr.vmem [resolvable:$true] %s1037_s29 }
 0x130   : > { %s1666_s9 = scalar_lea.vmem %s2035_s29, 4096  ;;  %s1735_s19 = smov [#allocation4]  }
 0x131   : > { %p1667_p13 = scmp.ne.s32.totalorder %s2035_s29, %s1666_s9  ;;  %s1670_s10 = sshll.u32 %s1735_s19, 4  ;;  %s1671_s10 = int_to_ptr.vmem [resolvable:$false] %s1670_s10 }
 0x132   : > { %s1672_s11 = scalar_lea.vmem %s1671_s10, 8192  ;;  %p1673_p2 = scmp.lt.s32.totalorder %s2035_s29, %s1671_s10 }
 0x133   : > { %p1668_p0 = pnand %p1667_p13, %p1801_p5  ;;  %p1674_p3 = scmp.lt.s32.totalorder %s1672_s11, %s1666_s9 }
 0x135   : > { %p1669_p1 = pneg %p1668_p0  ;;  %p1675_p4 = por %p1674_p3, %p1673_p2 }
 0x137   : > { %p1676_p7 = pnand %p1675_p4, %p1669_p1 }
 0x1a2   : > { %v1514_v36 = vpop.f32.mrf.mxu0 }
 0x1a3   : > { %811 = vst [vmem:[%s1996_s5 + $0x8] sm:$0xff] %v1514_v36 }
 0x1a4   : > { %v651_v37 = vpop.f32.mrf.mxu0 }
 0x1a5   : > { %810 = vst [vmem:[%s1996_s5] sm:$0xff] %v651_v37 }
 0x1a6   : > { %v1517_v38 = vpop.f32.mrf.mxu0 }
 0x1a7   : > { %813 = vst [vmem:[%s1996_s5 + $0x18] sm:$0xff] %v1517_v38 }
 0x1a8   : > { %v661_v39 = vpop.f32.mrf.mxu0 }
 0x1a9   : > { %812 = vst [vmem:[%s1996_s5 + $0x10] sm:$0xff] %v661_v39 }
 0x1aa   : > { %v1520_v40 = vpop.f32.mrf.mxu0 }
 0x1ab   : > { %815 = vst [vmem:[%s1996_s5 + $0x28] sm:$0xff] %v1520_v40 }
 0x1ac   : > { %v671_v41 = vpop.f32.mrf.mxu0 }
 0x1ad   : > { %814 = vst [vmem:[%s1996_s5 + $0x20] sm:$0xff] %v671_v41 }
 0x1ae   : > { %v1523_v42 = vpop.f32.mrf.mxu1 }
 0x1af   : > { %817 = vst [vmem:[%s1996_s5 + $0x38] sm:$0xff] %v1523_v42 }
 0x1b0   : > { %v681_v43 = vpop.f32.mrf.mxu1 }
 0x1b1   : > { %816 = vst [vmem:[%s1996_s5 + $0x30] sm:$0xff] %v681_v43 }
 0x1b2   : > { %v1526_v44 = vpop.f32.mrf.mxu1 }
 0x1b3   : > { %819 = vst [vmem:[%s1996_s5 + $0x48] sm:$0xff] %v1526_v44 }
 0x1b4   : > { %v691_v45 = vpop.f32.mrf.mxu1 }
 0x1b5   : > { %818 = vst [vmem:[%s1996_s5 + $0x40] sm:$0xff] %v691_v45 }
 0x1b6   : > { %v1529_v46 = vpop.f32.mrf.mxu1 }
 0x1b7   : > { %821 = vst [vmem:[%s1996_s5 + $0x58] sm:$0xff] %v1529_v46 }
 0x1b8   : > { %v701_v47 = vpop.f32.mrf.mxu1 }
 0x1b9   : > { %820 = vst [vmem:[%s1996_s5 + $0x50] sm:$0xff] %v701_v47 }
 0x1ba   : > { %v1532_v48 = vpop.f32.mrf.mxu1 }
 0x1bb   : > { %823 = vst [vmem:[%s1996_s5 + $0x68] sm:$0xff] %v1532_v48 }
 0x1bc   : > { %v711_v49 = vpop.f32.mrf.mxu1 }
 0x1bd   : > { %822 = vst [vmem:[%s1996_s5 + $0x60] sm:$0xff] %v711_v49 }
 0x1be   : > { %v1535_v50 = vpop.f32.mrf.mxu1 }
 0x1bf   : > { %825 = vst [vmem:[%s1996_s5 + $0x78] sm:$0xff] %v1535_v50 }
 0x1c0   : > { %v721_v51 = vpop.f32.mrf.mxu1 }
 0x1c1   : > { %824 = vst [vmem:[%s1996_s5 + $0x70] sm:$0xff] %v721_v51 }
 0x1c2   : > { %v1538_v52 = vpop.f32.mrf.mxu1 }
 0x1c3   : > { %827 = vst [vmem:[%s1996_s5 + $0x88] sm:$0xff] %v1538_v52 }
 0x1c4   : > { %v731_v53 = vpop.f32.mrf.mxu1 }
 0x1c5   : > { %826 = vst [vmem:[%s1996_s5 + $0x80] sm:$0xff] %v731_v53 }
 0x1c6   : > { %v1541_v54 = vpop.f32.mrf.mxu1 }
 0x1c7   : > { %829 = vst [vmem:[%s1996_s5 + $0x98] sm:$0xff] %v1541_v54 }
 0x1c8   : > { %v741_v55 = vpop.f32.mrf.mxu1 }
 0x1c9   : > { %828 = vst [vmem:[%s1996_s5 + $0x90] sm:$0xff] %v741_v55 }
 0x1ca   : > { %v1544_v56 = vpop.f32.mrf.mxu1 }
 0x1cb   : > { %831 = vst [vmem:[%s1996_s5 + $0xa8] sm:$0xff] %v1544_v56 }
 0x1cc   : > { %v751_v57 = vpop.f32.mrf.mxu1 }
 0x1cd   : > { %830 = vst [vmem:[%s1996_s5 + $0xa0] sm:$0xff] %v751_v57 }
 0x1ce   : > { %v1547_v58 = vpop.f32.mrf.mxu1 }
 0x1cf   : > { %833 = vst [vmem:[%s1996_s5 + $0xb8] sm:$0xff] %v1547_v58 }
 0x1d0   : > { %v761_v59 = vpop.f32.mrf.mxu1 }
 0x1d1   : > { %832 = vst [vmem:[%s1996_s5 + $0xb0] sm:$0xff] %v761_v59 }
 0x1d2   : > { %v1550_v60 = vpop.f32.mrf.mxu1 }
 0x1d3   : > { %835 = vst [vmem:[%s1996_s5 + $0xc8] sm:$0xff] %v1550_v60 }
 0x1d4   : > { %v771_v61 = vpop.f32.mrf.mxu1 }
 0x1d5   : > { %834 = vst [vmem:[%s1996_s5 + $0xc0] sm:$0xff] %v771_v61 }
 0x1d6   : > { %v1553_v62 = vpop.f32.mrf.mxu1 }
 0x1d7   : > { %837 = vst [vmem:[%s1996_s5 + $0xd8] sm:$0xff] %v1553_v62 }
 0x1d8   : > { %v781_v63 = vpop.f32.mrf.mxu1 }
 0x1d9   : > { %836 = vst [vmem:[%s1996_s5 + $0xd0] sm:$0xff] %v781_v63 }
 0x1da   : > { %v1556_v0 = vpop.f32.mrf.mxu1 }
 0x1db   : > { %839 = vst [vmem:[%s1996_s5 + $0xe8] sm:$0xff] %v1556_v0 }
 0x1dc   : > { %v791_v1 = vpop.f32.mrf.mxu1 }
 0x1dd   : > { %838 = vst [vmem:[%s1996_s5 + $0xe0] sm:$0xff] %v791_v1 }
 0x1de   : > { %v1559_v2 = vpop.f32.mrf.mxu1 }
 0x1df   : > { %841 = vst [vmem:[%s1996_s5 + $0xf8] sm:$0xff] %v1559_v2 }
 0x1e0   : > { %v801_v3 = vpop.f32.mrf.mxu1 }
 0x1e1   : > { %840 = vst [vmem:[%s1996_s5 + $0xf0] sm:$0xff] %v801_v3 }
 0x1e2   : > { %1679 = shalt.err (!%p1676_p7)
}
 0x1e3   : > { %s1680_s12 = scalar_lea.hbm %s2033_s7, 4096  ;;  %s1684_s20 = scalar_lea.hbm %s2083_s4, 8192 }
 0x1e4   : > { %p1681_p8 = scmp.ne.s32.totalorder %s2033_s7, %s1680_s12  ;;  %p1685_p11 = scmp.lt.s32.totalorder %s2033_s7, %s2083_s4 }
 0x1e5   : > { %p1686_p12 = scmp.lt.s32.totalorder %s1684_s20, %s1680_s12 }
 0x1e6   : > { %p1682_p9 = pnand %p1681_p8, %p1801_p5 }
 0x1e7   : > { %p1687_p13 = por %p1686_p12, %p1685_p11 }
 0x1e8   : > { %p1683_p10 = pneg %p1682_p9 }
 0x1ea   : > { %p1688_p0 = pnand %p1687_p13, %p1683_p10 }
 0x1ec   : > { %1691 = shalt.err (!%p1688_p0)
}
 0x1ed   : > { %s1736_s5 = smov 128   ;;  %s1737_s22 = smov 8  }
 0x1ee   : > { %1593 = dma.vmem_to_hbm [thread:$0]  (%p1801_p5), %s2035_s29, 4096, %s2033_s7, %s1008_s8, %s1736_s5, %s1736_s5, %s1737_s22  }
 0x1ef PF: > { %p1603_p1 = scmp.ge.s32.totalorder %s1730_s18, 2  ;;  %s1052_s30 = sand.u32 1, %s1718_s15  }
 0x1f0   : > { %s1053_s6 = scalar_lea.sflag [#allocation3], %s1052_s30 }
 0x1f1   : > { %p1597_p2 = pnand %p1603_p1, %p1805_p6 }
 0x1f3   : > { %p1598_p3 = pneg %p1597_p2 }
 0x1f5   : > { %1709 = dma.done.wait (%p1598_p3), %s1053_s6, 2048  }
 0x1f6   : > { %1711 = vsyncadd (%p1598_p3), %s1053_s6, 4294965248  ;;  %s1062_s9 = scalar_lea.sflag [#allocation5], %s1052_s30 }
 0x1f7   : > { %1713 = dma.done.wait (%p1598_p3), %s1062_s9, 4096  }
 0x1f8   : > { %1715 = vsyncadd (%p1598_p3), %s1062_s9, 4294963200  ;;  %p18_p5 = scmp.ge.s32.totalorder %s1788_s21, 4   ;;  %s2086_s15 = smov %s1722_s16 }
 0x1f9   : > { %s2087_s16 = smov %s1726_s17  ;;  %s2088_s17 = smov %s1799_s24 }
 0x1fa   : > { %s2089_s18 = smov %s1788_s21  ;;  %20 = sbr.rel (!%p18_p5) target bundleno = 5 (0x5), region = 84 }
 0x1ff   :  { %1067 = vsyncpa [#allocation3], 1 }
 0x200   :  { %1069 = vsyncpa [#allocation3 + $0x1], 1 }
 0x201   :  { %1070 = vsyncpa [#allocation5], 1 }
 0x202   :  { %1072 = vsyncpa [#allocation5 + $0x1], 1 }

</bundles_post_ra>
